<compile_context>
chip_gen: v5e
topology: v5e:2x2
jax: 0.10.0
libtpu: 0.0.40
codegen_flags: <defaults>
</compile_context>

<pallas_src>
import functools

import jax
import jax.numpy as jnp
import numpy as np
from jax import lax
from jax.experimental import pallas as pl
from jax.experimental.pallas import tpu as pltpu


def _fold_kernel(p_ref, w_ref, o_ref):
    """fold_applied=True: BN folded into weights/bias -> conv + ReLU only.

    p_ref : (N, Kp, HW)    im2col patches (+ ones bias row, zero pad rows)
    w_ref : (Cout, Kp)     BN-folded weights (+ folded-bias column, zero pad)
    o_ref : (N, Cout, HW)  output, NCHW-flattened
    """
    w = w_ref[...]
    for n in range(p_ref.shape[0]):                       # N=2, static unroll
        x1 = jnp.dot(w, p_ref[n], preferred_element_type=jnp.float32)
        o_ref[n] = jnp.maximum(x1, 0.0).astype(o_ref.dtype)


def _nofold_kernel(p_ref, w_ref, ss_ref, o_ref):
    """fold_applied=False: y = relu(scale*x1 + shift) + x1, x1 = conv + bias.

    ss_ref : (Cout, 2)  packed per-channel [scale, shift]
    """
    w = w_ref[...]
    scale = ss_ref[:, 0:1]
    shift = ss_ref[:, 1:2]
    for n in range(p_ref.shape[0]):                       # N=2, static unroll
        x1 = jnp.dot(w, p_ref[n], preferred_element_type=jnp.float32)
        o_ref[n] = (jnp.maximum(x1 * scale + shift, 0.0) + x1).astype(o_ref.dtype)


def make_bn_folding_params(conv_w_oihw, conv_b, gamma, beta, run_mean, run_var,
                           *, fold_applied, eps=1e-5):
    """One-time host-side parameter prep: BN fold + bias-in-matmul packing.

    Returns (w_ext, scale_shift):
      w_ext       : (Cout, Kp) f32, Kp = round_up(Cin*KH*KW + 1, 8).  Column K
                    holds the (folded) bias; trailing columns are zero.
      scale_shift : (Cout, 2) f32 [scale, shift] when fold_applied=False, else None.
    """
    w = np.asarray(conv_w_oihw, np.float32)
    cb = np.asarray(conv_b, np.float32)
    gamma = np.asarray(gamma, np.float32)
    beta = np.asarray(beta, np.float32)
    mean = np.asarray(run_mean, np.float32)
    var = np.asarray(run_var, np.float32)

    cout, cin, kh, kw = w.shape
    k = cin * kh * kw
    kp = -(-(k + 1) // 8) * 8                             # +1 bias row, pad to x8

    scale = gamma / np.sqrt(var + eps)
    shift = beta - mean * scale
    w_flat = w.reshape(cout, k)

    w_ext = np.zeros((cout, kp), np.float32)
    if fold_applied:
        w_ext[:, :k] = w_flat * scale[:, None]            # BN folded into weights
        w_ext[:, k] = cb * scale + shift                  # folded bias column
        scale_shift = None
    else:
        w_ext[:, :k] = w_flat                             # raw conv (x1 needed for residual)
        w_ext[:, k] = cb
        scale_shift = jnp.asarray(np.stack([scale, shift], axis=1))
    return jnp.asarray(w_ext), scale_shift


@functools.partial(jax.jit, static_argnames=("fold_applied", "kh", "kw", "padding"))
def bn_folding_forward(x_nchw, w_ext, scale_shift, *, fold_applied, kh, kw,
                       padding=1):
    """Forward pass of BNFoldingNet.  x_nchw: (N, Cin, H, W) f32, stride 1."""
    n, cin, h, wdim = x_nchw.shape
    cout, kp = w_ext.shape
    k = cin * kh * kw
    ho = h + 2 * padding - kh + 1
    wo = wdim + 2 * padding - kw + 1
    hw = ho * wo

    # im2col as ONE fused XLA op; feature ordering = (Cin, KH, KW) row-major,
    # matching conv_w.reshape(Cout, Cin*KH*KW).
    patches = lax.conv_general_dilated_patches(
        x_nchw.astype(jnp.float32), (kh, kw), (1, 1),
        padding=((padding, padding), (padding, padding)),
        precision=lax.Precision.HIGHEST)                  # (N, K, Ho, Wo)
    patches = patches.reshape(n, k, hw)
    # Bias-in-matmul: append a constant-ones row, then zero-pad K -> Kp.
    patches = jnp.concatenate(
        [patches,
         jnp.ones((n, 1, hw), jnp.float32),
         jnp.zeros((n, kp - k - 1, hw), jnp.float32)], axis=1)  # (N, Kp, HW)

    if fold_applied:
        kernel = _fold_kernel
        operands = (patches, w_ext)
        in_specs = [
            pl.BlockSpec((n, kp, hw), lambda i: (0, 0, 0)),
            pl.BlockSpec((cout, kp), lambda i: (0, 0)),
        ]
    else:
        kernel = _nofold_kernel
        operands = (patches, w_ext, scale_shift)
        in_specs = [
            pl.BlockSpec((n, kp, hw), lambda i: (0, 0, 0)),
            pl.BlockSpec((cout, kp), lambda i: (0, 0)),
            pl.BlockSpec((cout, 2), lambda i: (0, 0)),
        ]

    out = pl.pallas_call(
        kernel,
        out_shape=jax.ShapeDtypeStruct((n, cout, hw), jnp.float32),
        grid=(1,),                                        # single step: whole problem
        in_specs=in_specs,
        out_specs=pl.BlockSpec((n, cout, hw), lambda i: (0, 0, 0)),
        compiler_params=pltpu.CompilerParams(
            dimension_semantics=("arbitrary",)),
    )(*operands)

    return out.reshape(n, cout, ho, wo)                   # free reshape, already NCHW


def _reference(x_nchw, conv_w_oihw, conv_b, gamma, beta, run_mean, run_var,
               *, fold_applied, eps=1e-5, padding=1):
    """Pure-JAX reference (eval-mode BN), NCHW throughout."""
    x1 = lax.conv_general_dilated(
        x_nchw, conv_w_oihw, window_strides=(1, 1),
        padding=((padding, padding), (padding, padding)),
        dimension_numbers=("NCHW", "OIHW", "NCHW"))
    x1 = x1 + conv_b[None, :, None, None]
    bn = (x1 - run_mean[None, :, None, None]) / jnp.sqrt(run_var + eps)[None, :, None, None]
    bn = bn * gamma[None, :, None, None] + beta[None, :, None, None]
    y = jnp.maximum(bn, 0.0)
    if not fold_applied:
        y = y + x1
    return y


if __name__ == "__main__":
    # Small deterministic setup: Conv2d(4, 8, kernel_size=3, padding=1, bias=True)
    N, Cin, H, W = 2, 4, 16, 16
    Cout, KH, KW = 8, 3, 3

    key = jax.random.PRNGKey(0)
    ks = jax.random.split(key, 7)
    x = jax.random.normal(ks[0], (N, Cin, H, W), dtype=jnp.float32)
    conv_w = jax.random.normal(ks[1], (Cout, Cin, KH, KW), dtype=jnp.float32) * 0.1
    conv_b = jax.random.normal(ks[2], (Cout,), dtype=jnp.float32) * 0.1
    gamma = 1.0 + 0.1 * jax.random.normal(ks[3], (Cout,), dtype=jnp.float32)
    beta = 0.1 * jax.random.normal(ks[4], (Cout,), dtype=jnp.float32)
    run_mean = 0.1 * jax.random.normal(ks[5], (Cout,), dtype=jnp.float32)
    run_var = jnp.abs(jax.random.normal(ks[6], (Cout,), dtype=jnp.float32)) + 0.5

    ok = True
    for fold_applied in (True, False):
        # One-time parameter prep (hoisted out of the forward path).
        w_ext, scale_shift = make_bn_folding_params(
            conv_w, conv_b, gamma, beta, run_mean, run_var,
            fold_applied=fold_applied)
        out = bn_folding_forward(x, w_ext, scale_shift,
                                 fold_applied=fold_applied, kh=KH, kw=KW,
                                 padding=1)
        out = jax.block_until_ready(out)
        ref = _reference(x, conv_w, conv_b, gamma, beta, run_mean, run_var,
                         fold_applied=fold_applied)
        if not np.allclose(np.asarray(out), np.asarray(ref), atol=1e-4, rtol=1e-4):
            ok = False

    if ok:
        print("KERNEL_OK")
</pallas_src>

<mosaic_0001>
module attributes {stable_mosaic.version = 11 : i64} {
  func.func @_fold_kernel(%arg0: i32, %arg1: memref<2x40x256xf32, #tpu.memory_space<vmem>>, %arg2: memref<8x40xf32, #tpu.memory_space<vmem>>, %arg3: memref<2x8x256xf32, #tpu.memory_space<vmem>>) attributes {dimension_semantics = [#tpu.dimension_semantics<arbitrary>], iteration_bounds = array<i64: 1>, scalar_prefetch = 0 : i64, scratch_operands = 0 : i64, tpu.core_type = #tpu.core_type<tc>, window_params = [{pipeline_mode = #tpu.pipeline_mode<synchronous>, transform_indices = @transform_0, window_bounds = array<i64: 2, 40, 256>}, {pipeline_mode = #tpu.pipeline_mode<synchronous>, transform_indices = @transform_1, window_bounds = array<i64: 8, 40>}, {pipeline_mode = #tpu.pipeline_mode<synchronous>, transform_indices = @transform_2, window_bounds = array<i64: 2, 8, 256>}]} {
    %c0 = arith.constant 0 : index
    %c0_0 = arith.constant 0 : index
    %0 = vector.load %arg2[%c0, %c0_0] : memref<8x40xf32, #tpu.memory_space<vmem>>, vector<8x40xf32>
    %c0_1 = arith.constant 0 : index
    %c0_2 = arith.constant 0 : index
    %c0_3 = arith.constant 0 : index
    %1 = vector.load %arg1[%c0_1, %c0_2, %c0_3] : memref<2x40x256xf32, #tpu.memory_space<vmem>>, vector<1x40x256xf32>
    %2 = vector.shape_cast %1 : vector<1x40x256xf32> to vector<40x256xf32>
    %cst = arith.constant dense<0.000000e+00> : vector<8x256xf32>
    %3 = tpu.matmul %0, %2, %cst {dimension_numbers = #tpu.dot_dimension_numbers<[1], [0], [0], [1], [0, 0, 1, 1], [], []>} : vector<8x40xf32>, vector<40x256xf32>, vector<8x256xf32> -> vector<8x256xf32>
    %cst_4 = arith.constant 0.000000e+00 : f32
    %4 = vector.broadcast %cst_4 : f32 to vector<8x256xf32>
    %5 = arith.maximumf %3, %4 : vector<8x256xf32>
    %c0_5 = arith.constant 0 : index
    %c0_6 = arith.constant 0 : index
    %c0_7 = arith.constant 0 : index
    %6 = vector.load %arg3[%c0_5, %c0_6, %c0_7] : memref<2x8x256xf32, #tpu.memory_space<vmem>>, vector<1x8x256xf32>
    %7 = vector.shape_cast %6 : vector<1x8x256xf32> to vector<8x256xf32>
    %8 = vector.shape_cast %5 : vector<8x256xf32> to vector<1x8x256xf32>
    tpu.vector_store %arg3[%c0_5, %c0_6, %c0_7], %8 {strides = array<i32>} : memref<2x8x256xf32, #tpu.memory_space<vmem>>, vector<1x8x256xf32>,
    %c1 = arith.constant 1 : index
    %c0_8 = arith.constant 0 : index
    %c0_9 = arith.constant 0 : index
    %9 = vector.load %arg1[%c1, %c0_8, %c0_9] : memref<2x40x256xf32, #tpu.memory_space<vmem>>, vector<1x40x256xf32>
    %10 = vector.shape_cast %9 : vector<1x40x256xf32> to vector<40x256xf32>
    %cst_10 = arith.constant dense<0.000000e+00> : vector<8x256xf32>
    %11 = tpu.matmul %0, %10, %cst_10 {dimension_numbers = #tpu.dot_dimension_numbers<[1], [0], [0], [1], [0, 0, 1, 1], [], []>} : vector<8x40xf32>, vector<40x256xf32>, vector<8x256xf32> -> vector<8x256xf32>
    %cst_11 = arith.constant 0.000000e+00 : f32
    %12 = vector.broadcast %cst_11 : f32 to vector<8x256xf32>
    %13 = arith.maximumf %11, %12 : vector<8x256xf32>
    %c1_12 = arith.constant 1 : index
    %c0_13 = arith.constant 0 : index
    %c0_14 = arith.constant 0 : index
    %14 = vector.load %arg3[%c1_12, %c0_13, %c0_14] : memref<2x8x256xf32, #tpu.memory_space<vmem>>, vector<1x8x256xf32>
    %15 = vector.shape_cast %14 : vector<1x8x256xf32> to vector<8x256xf32>
    %16 = vector.shape_cast %13 : vector<8x256xf32> to vector<1x8x256xf32>
    tpu.vector_store %arg3[%c1_12, %c0_13, %c0_14], %16 {strides = array<i32>} : memref<2x8x256xf32, #tpu.memory_space<vmem>>, vector<1x8x256xf32>,
    return
  }
  func.func @transform_0(%arg0: i32) -> (i32, i32, i32) {
    %c0_i32 = arith.constant 0 : i32
    %c0_i32_0 = arith.constant 0 : i32
    %c0_i32_1 = arith.constant 0 : i32
    %c0_i32_2 = arith.constant 0 : i32
    return %c0_i32, %c0_i32_0, %c0_i32_1 : i32, i32, i32
  }
  func.func @transform_1(%arg0: i32) -> (i32, i32) {
    %c0_i32 = arith.constant 0 : i32
    %c0_i32_0 = arith.constant 0 : i32
    %c0_i32_1 = arith.constant 0 : i32
    return %c0_i32, %c0_i32_0 : i32, i32
  }
  func.func @transform_2(%arg0: i32) -> (i32, i32, i32) {
    %c0_i32 = arith.constant 0 : i32
    %c0_i32_0 = arith.constant 0 : i32
    %c0_i32_1 = arith.constant 0 : i32
    %c0_i32_2 = arith.constant 0 : i32
    return %c0_i32, %c0_i32_0, %c0_i32_1 : i32, i32, i32
  }
}

</mosaic_0001>

<bundles_post_ra>
// kernel: bn_folding_forward.1
= control target key start
LH: loop header
LB: loop body
LE: loop exit
PB: predicated region body
PF: predicated region fallthrough
CT: control target
= control target key end

     0   :  { %vm22_vm0 = vcmask 326656   ;;  %s240_s0 = inlined_call_operand.vmem [shape: f32[2,40,256], index: 0, kind: input, shape index: {}]   ;;  %s241_s1 = inlined_call_operand.vmem [shape: f32[8,40], index: 1, kind: input, shape index: {}]   ;;  %s242_s2 = inlined_call_operand.vmem [shape: f32[2,8,256], index: 2, kind: output, shape index: {}]  }
   0x1   :  { %v140_v0 = vld [vmem:[%s240_s0 + $0x90] sm:$0xff]  ;;  %v141_v1 = vld [vmem:[%s240_s0 + $0x98] sm:$0xff]  ;;  %v138_v2 = vld [vmem:[%s240_s0 + $0x80] sm:$0xff] }
   0x2   :  { %92 = vmatpush.msra.mxu2 %v140_v0  ;;  %112 = vmatpush.msra.mxu3 %v141_v1  ;;  %v139_v3 = vld [vmem:[%s240_s0 + $0x88] sm:$0xff]  ;;  %v136_v4 = vld [vmem:[%s240_s0 + $0x70] sm:$0xff]  ;;  %v137_v5 = vld [vmem:[%s240_s0 + $0x78] sm:$0xff] }
   0x3   :  { %v20_v6 = vld [vmem:[%s240_s0 + $0x40] sm:$0xff]  ;;  %v21_v7 = vld [vmem:[%s240_s0 + $0x48] sm:$0xff]  ;;  %v18_v8 = vld [vmem:[%s240_s0 + $0x30] sm:$0xff] }
   0x4   :  { %93 = vmatpush.msra.mxu2 %v138_v2  ;;  %113 = vmatpush.msra.mxu3 %v139_v3  ;;  %v19_v9 = vld [vmem:[%s240_s0 + $0x38] sm:$0xff]  ;;  %v134_v10 = vld [vmem:[%s240_s0 + $0x60] sm:$0xff]  ;;  %v135_v11 = vld [vmem:[%s240_s0 + $0x68] sm:$0xff] }
   0x5   :  { %37 = vmatpush.msra.mxu0 %v20_v6  ;;  %57 = vmatpush.msra.mxu1 %v21_v7  ;;  %v16_v12 = vld [vmem:[%s240_s0 + $0x20] sm:$0xff]  ;;  %v17_v13 = vld [vmem:[%s240_s0 + $0x28] sm:$0xff]  ;;  %v132_v14 = vld [vmem:[%s240_s0 + $0x50] sm:$0xff] }
   0x6   :  { %94 = vmatpush.msra.mxu2 %v136_v4  ;;  %114 = vmatpush.msra.mxu3 %v137_v5  ;;  %v133_v15 = vld [vmem:[%s240_s0 + $0x58] sm:$0xff]  ;;  %v11_v16 = vld [vmem:[%s241_s1] sm:$0xff]  ;;  %v14_v17 = vld [vmem:[%s240_s0 + $0x10] sm:$0xff] }
   0x7   :  { %38 = vmatpush.msra.mxu0 %v18_v8  ;;  %58 = vmatpush.msra.mxu1 %v19_v9  ;;  %v15_v18 = vld [vmem:[%s240_s0 + $0x18] sm:$0xff]  ;;  %v12_v19 = vld [vmem:[%s240_s0] sm:$0xff]  ;;  %v13_v20 = vld [vmem:[%s240_s0 + $0x8] sm:$0xff] }
   0x8   :  { %95 = vmatpush.msra.mxu2 %v134_v10  ;;  %115 = vmatpush.msra.mxu3 %v135_v11 }
   0x9   :  { %39 = vmatpush.msra.mxu0 %v16_v12  ;;  %59 = vmatpush.msra.mxu1 %v17_v13 }
   0xa   :  { %96 = vmatpush.msra.mxu2 %v132_v14  ;;  %116 = vmatpush.msra.mxu3 %v133_v15 }
   0xb   :  { %142 = vmatmul.msk.f32.vlgmr.msra.gmra.mxu2 %vm22_vm0, %v11_v16  ;;  %143 = vmatmul.msk.f32.vlgmr.msra.gmra.mxu3 %vm22_vm0, %v11_v16 }
   0xc   :  { %40 = vmatpush.msra.mxu0 %v14_v17  ;;  %60 = vmatpush.msra.mxu1 %v15_v18 }
   0xe   :  { %41 = vmatpush.msra.mxu0 %v12_v19  ;;  %61 = vmatpush.msra.mxu1 %v13_v20 }
   0xf   :  { %130 = vmatmul.msk.f32.vlgmr.msra.gmra.mxu0 %vm22_vm0, %v11_v16  ;;  %131 = vmatmul.msk.f32.vlgmr.msra.gmra.mxu1 %vm22_vm0, %v11_v16 }
  0x8c   :  { %v43_v21 = vpop.f32.mrf.mxu0  ;;  %v63_v22 = vpop.f32.mrf.mxu1 }
  0x8d   :  { %v66_v23 = vmax.f32 %v43_v21, 0.0  ;;  %v67_v24 = vmax.f32 %v63_v22, 0.0 }
  0x8e   :  { %v98_v25 = vpop.f32.mrf.mxu2  ;;  %v118_v26 = vpop.f32.mrf.mxu3 }
  0x8f   :  { %68 = vst [vmem:[%s242_s2] sm:$0xff] %v66_v23  ;;  %v121_v27 = vmax.f32 %v98_v25, 0.0  ;;  %v122_v28 = vmax.f32 %v118_v26, 0.0 }
  0x90   :  { %69 = vst [vmem:[%s242_s2 + $0x8] sm:$0xff] %v67_v24 }
  0x91   :  { %144 = vst [vmem:[%s242_s2 + $0x10] sm:$0xff] %v121_v27 }
  0x92   :  { %145 = vst [vmem:[%s242_s2 + $0x18] sm:$0xff] %v122_v28 }

</bundles_post_ra>
